<compile_context>
chip_gen: v6e
topology: v6e:2x2x1
jax: 0.10.0
libtpu: 0.0.40
codegen_flags: <defaults>
</compile_context>

<pallas_src>
import jax
import jax.numpy as jnp
from jax.experimental import pallas as pl
from jax.experimental.pallas import tpu as pltpu

BN_EPS = 1e-5
_INV_SQRT2 = 0.7071067811865476  # 1/sqrt(2)


def dino_head_kernel(x_ref, w1_ref, gamma_ref, beta_ref, w2_ref,
                     o_ref, acc_ref):
    j = pl.program_id(1)  # hidden-tile index (reduction axis)

    @pl.when(j == 0)
    def _init():
        acc_ref[...] = jnp.zeros_like(acc_ref)

    # ---- Linear 1 tile: (B, in) @ (in, TN) on the MXU (bf16 in, f32 acc) ---
    h = jnp.dot(x_ref[...], w1_ref[...], preferred_element_type=jnp.float32)
    # NOTE: Linear-1 bias intentionally omitted -- a constant per-channel
    # shift cancels exactly under the train-mode BatchNorm below.

    # ---- BatchNorm1d (training mode, biased variance), folded affine -------
    mean = jnp.mean(h, axis=0, keepdims=True)              # (1, TN)
    hc = h - mean
    var = jnp.mean(hc * hc, axis=0, keepdims=True)         # (1, TN)
    scale = gamma_ref[...] * jax.lax.rsqrt(var + BN_EPS)   # (1, TN)
    shift = beta_ref[...] - mean * scale                   # (1, TN)
    h = h * scale + shift                                  # single pass

    # ---- GELU (exact erf form, matching torch.nn.GELU default) -------------
    h = 0.5 * h * (1.0 + jax.lax.erf(h * _INV_SQRT2))

    # ---- Linear 2 partial: (B, TN) @ (TN, bottleneck), accumulate ----------
    acc_ref[...] += jnp.dot(h.astype(jnp.bfloat16), w2_ref[...],
                            preferred_element_type=jnp.float32)

    @pl.when(j == pl.num_programs(1) - 1)
    def _finalize():
        o_ref[...] = acc_ref[...].astype(o_ref.dtype)


def _choose_hidden_tile(hidden_dim):
    for cand in (512, 256, 128):
        if hidden_dim % cand == 0:
            return cand
    return hidden_dim


def dino_head_forward(x, params, *, tn=None, num_cores=1):
    """Forward pass of DinoHead.mlp. params = (w1, b1, gamma, beta, w2, b2)."""
    w1, b1, gamma, beta, w2, b2 = params
    del b1  # Mathematical no-op under train-mode BatchNorm (cancels exactly).

    B, in_dim = x.shape
    hidden_dim = w1.shape[1]
    bottleneck_dim = w2.shape[1]

    if tn is None:
        tn = _choose_hidden_tile(hidden_dim)
    assert hidden_dim % tn == 0, (hidden_dim, tn)
    n_tiles = hidden_dim // tn
    if n_tiles % num_cores != 0:
        num_cores = 1
    tiles_per_core = n_tiles // num_cores

    # bf16 operands for the MXU; BN/GELU math stays in f32 inside the kernel.
    x_bf = x.astype(jnp.bfloat16)
    w1_bf = w1.astype(jnp.bfloat16)
    w2_bf = w2.astype(jnp.bfloat16)
    gamma2 = gamma.reshape(1, hidden_dim).astype(jnp.float32)
    beta2 = beta.reshape(1, hidden_dim).astype(jnp.float32)

    def hid_tile(p, j):
        return p * tiles_per_core + j

    cost = pl.CostEstimate(
        flops=int(2 * B * in_dim * hidden_dim
                  + 2 * B * hidden_dim * bottleneck_dim
                  + 10 * B * hidden_dim),
        transcendentals=int(B * hidden_dim + hidden_dim),
        bytes_accessed=int(x_bf.size * 2 + w1_bf.size * 2 + w2_bf.size * 2
                           + gamma2.size * 4 + beta2.size * 4
                           + num_cores * B * bottleneck_dim * 4),
    )

    partials = pl.pallas_call(
        dino_head_kernel,
        out_shape=jax.ShapeDtypeStruct((num_cores, B, bottleneck_dim),
                                       jnp.float32),
        grid_spec=pltpu.PrefetchScalarGridSpec(
            num_scalar_prefetch=0,
            grid=(num_cores, tiles_per_core),
            in_specs=[
                # x: fully resident across the grid.
                pl.BlockSpec((B, in_dim), lambda p, j: (0, 0)),
                # w1: streamed hidden tiles (double-buffered by Pallas).
                pl.BlockSpec((in_dim, tn), lambda p, j: (0, hid_tile(p, j))),
                # BN affine params: per-channel tiles.
                pl.BlockSpec((1, tn), lambda p, j: (0, hid_tile(p, j))),
                pl.BlockSpec((1, tn), lambda p, j: (0, hid_tile(p, j))),
                # w2: streamed contraction tiles.
                pl.BlockSpec((tn, bottleneck_dim),
                             lambda p, j: (hid_tile(p, j), 0)),
            ],
            # Per-core partial output, resident across the reduction axis.
            out_specs=pl.BlockSpec((None, B, bottleneck_dim),
                                   lambda p, j: (p, 0, 0)),
            scratch_shapes=[pltpu.VMEM((B, bottleneck_dim), jnp.float32)],
        ),
        compiler_params=pltpu.CompilerParams(
            dimension_semantics=("parallel", "arbitrary"),
            vmem_limit_bytes=48 * 1024 * 1024,  # safe on v5e/v6e/v7x
        ),
        cost_estimate=cost,
    )(x_bf, w1_bf, gamma2, beta2, w2_bf)

    # Combine per-core partials and add the Linear-2 bias (trivial XLA ops).
    return partials.sum(axis=0) + b2.reshape(1, bottleneck_dim)


def dino_head_reference(x, params):
    """Pure-JAX f32 reference matching the PyTorch module (training-mode BN)."""
    w1, b1, gamma, beta, w2, b2 = params
    h = x @ w1 + b1.reshape(1, -1)
    mean = h.mean(axis=0, keepdims=True)
    var = ((h - mean) ** 2).mean(axis=0, keepdims=True)
    h = (h - mean) * jax.lax.rsqrt(var + BN_EPS)
    h = h * gamma.reshape(1, -1) + beta.reshape(1, -1)
    h = 0.5 * h * (1.0 + jax.lax.erf(h * _INV_SQRT2))
    return h @ w2 + b2.reshape(1, -1)


def init_params(key, in_dim, hidden_dim, bottleneck_dim):
    """Deterministic synthetic init (PyTorch-Linear-style uniform bounds)."""
    k1, k2, k3, k4 = jax.random.split(key, 4)
    bound1 = 1.0 / jnp.sqrt(in_dim)
    bound2 = 1.0 / jnp.sqrt(hidden_dim)
    w1 = jax.random.uniform(k1, (in_dim, hidden_dim), jnp.float32, -bound1, bound1)
    b1 = jax.random.uniform(k2, (1, hidden_dim), jnp.float32, -bound1, bound1)
    gamma = jnp.ones((1, hidden_dim), jnp.float32)   # BN weight
    beta = jnp.zeros((1, hidden_dim), jnp.float32)   # BN bias
    w2 = jax.random.uniform(k3, (hidden_dim, bottleneck_dim), jnp.float32,
                            -bound2, bound2)
    b2 = jax.random.uniform(k4, (1, bottleneck_dim), jnp.float32,
                            -bound2, bound2)
    return (w1, b1, gamma, beta, w2, b2)


if __name__ == "__main__":
    # Small, lane-friendly shapes (multiples of 128 on feature dims); real
    # DinoHead is in=2048, hidden=4096, bottleneck=256 and uses the same path.
    B, IN_DIM, HIDDEN_DIM, BOTTLENECK_DIM = 8, 128, 512, 128

    key = jax.random.PRNGKey(0)
    kx, kp = jax.random.split(key)
    x = jax.random.normal(kx, (B, IN_DIM), jnp.float32)
    params = init_params(kp, IN_DIM, HIDDEN_DIM, BOTTLENECK_DIM)

    # tn=128 / num_cores=2 exercises both the hidden-tile accumulation path
    # and the per-core partial-sum path (harmless size-2 loop on 1-TC chips).
    out = dino_head_forward(x, params, tn=128, num_cores=2)
    jax.block_until_ready(out)

    assert out.shape == (B, BOTTLENECK_DIM), out.shape
    assert out.dtype == jnp.float32, out.dtype

    ref = dino_head_reference(x, params)
    max_abs = float(jnp.max(jnp.abs(out - ref)))
    ref_scale = float(jnp.max(jnp.abs(ref))) + 1e-6
    assert max_abs / ref_scale < 0.1, (max_abs, ref_scale)

    print("KERNEL_OK")
</pallas_src>

<mosaic_0001>
module attributes {stable_mosaic.version = 11 : i64} {
  func.func @dino_head_kernel(%arg0: i32, %arg1: i32, %arg2: memref<8x128xbf16, #tpu.memory_space<vmem>>, %arg3: memref<128x128xbf16, #tpu.memory_space<vmem>>, %arg4: memref<1x128xf32, #tpu.memory_space<vmem>>, %arg5: memref<1x128xf32, #tpu.memory_space<vmem>>, %arg6: memref<128x128xbf16, #tpu.memory_space<vmem>>, %arg7: memref<1x8x128xf32, #tpu.memory_space<vmem>>, %arg8: memref<8x128xf32, #tpu.memory_space<vmem>>) attributes {dimension_semantics = [#tpu.dimension_semantics<parallel>, #tpu.dimension_semantics<arbitrary>], iteration_bounds = array<i64: 2, 2>, scalar_prefetch = 0 : i64, scratch_operands = 1 : i64, tpu.core_type = #tpu.core_type<tc>, window_params = [{pipeline_mode = #tpu.pipeline_mode<synchronous>, transform_indices = @transform_0, window_bounds = array<i64: 8, 128>}, {transform_indices = @transform_1, window_bounds = array<i64: 128, 128>}, {transform_indices = @transform_2, window_bounds = array<i64: 1, 128>}, {transform_indices = @transform_3, window_bounds = array<i64: 1, 128>}, {transform_indices = @transform_4, window_bounds = array<i64: 128, 128>}, {transform_indices = @transform_5, window_bounds = array<i64: 1, 8, 128>}]} {
    %c0_i32 = arith.constant 0 : i32
    %0 = arith.cmpi eq, %arg1, %c0_i32 : i32
    %1 = arith.extui %0 : i1 to i32
    %c0_i32_0 = arith.constant 0 : i32
    %2 = arith.cmpi ne, %1, %c0_i32_0 : i32
    scf.if %2 {
      %cst_24 = arith.constant 0.000000e+00 : f32
      %46 = vector.broadcast %cst_24 : f32 to vector<8x128xf32>
      %c0_25 = arith.constant 0 : index
      %c0_26 = arith.constant 0 : index
      %47 = vector.load %arg8[%c0_25, %c0_26] : memref<8x128xf32, #tpu.memory_space<vmem>>, vector<8x128xf32>
      tpu.vector_store %arg8[%c0_25, %c0_26], %46 {strides = array<i32>} : memref<8x128xf32, #tpu.memory_space<vmem>>, vector<8x128xf32>,
    } else {
    }
    %c0 = arith.constant 0 : index
    %c0_1 = arith.constant 0 : index
    %3 = vector.load %arg2[%c0, %c0_1] : memref<8x128xbf16, #tpu.memory_space<vmem>>, vector<8x128xbf16>
    %c0_2 = arith.constant 0 : index
    %c0_3 = arith.constant 0 : index
    %4 = vector.load %arg3[%c0_2, %c0_3] : memref<128x128xbf16, #tpu.memory_space<vmem>>, vector<128x128xbf16>
    %cst = arith.constant dense<0.000000e+00> : vector<8x128xf32>
    %5 = tpu.matmul %3, %4, %cst {dimension_numbers = #tpu.dot_dimension_numbers<[1], [0], [0], [1], [0, 0, 1, 1], [], []>} : vector<8x128xbf16>, vector<128x128xbf16>, vector<8x128xf32> -> vector<8x128xf32>
    %cst_4 = arith.constant dense<0.000000e+00> : vector<128xf32>
    %6 = vector.multi_reduction <add>, %5, %cst_4 [0] : vector<8x128xf32> to vector<128xf32>
    %7 = vector.shape_cast %6 : vector<128xf32> to vector<1x128xf32>
    %cst_5 = arith.constant 8.000000e+00 : f32
    %8 = vector.broadcast %cst_5 : f32 to vector<1x128xf32>
    %9 = arith.divf %7, %8 : vector<1x128xf32>
    %10 = vector.broadcast %9 : vector<1x128xf32> to vector<8x128xf32>
    %11 = arith.subf %5, %10 : vector<8x128xf32>
    %12 = arith.mulf %11, %11 : vector<8x128xf32>
    %cst_6 = arith.constant dense<0.000000e+00> : vector<128xf32>
    %13 = vector.multi_reduction <add>, %12, %cst_6 [0] : vector<8x128xf32> to vector<128xf32>
    %14 = vector.shape_cast %13 : vector<128xf32> to vector<1x128xf32>
    %cst_7 = arith.constant 8.000000e+00 : f32
    %15 = vector.broadcast %cst_7 : f32 to vector<1x128xf32>
    %16 = arith.divf %14, %15 : vector<1x128xf32>
    %c0_8 = arith.constant 0 : index
    %c0_9 = arith.constant 0 : index
    %17 = vector.load %arg4[%c0_8, %c0_9] : memref<1x128xf32, #tpu.memory_space<vmem>>, vector<1x128xf32>
    %cst_10 = arith.constant 9.99999974E-6 : f32
    %18 = vector.broadcast %cst_10 : f32 to vector<1x128xf32>
    %19 = arith.addf %16, %18 : vector<1x128xf32>
    %20 = math.rsqrt %19 : vector<1x128xf32>
    %21 = arith.mulf %17, %20 : vector<1x128xf32>
    %c0_11 = arith.constant 0 : index
    %c0_12 = arith.constant 0 : index
    %22 = vector.load %arg5[%c0_11, %c0_12] : memref<1x128xf32, #tpu.memory_space<vmem>>, vector<1x128xf32>
    %23 = arith.mulf %9, %21 : vector<1x128xf32>
    %24 = arith.subf %22, %23 : vector<1x128xf32>
    %25 = vector.broadcast %21 : vector<1x128xf32> to vector<8x128xf32>
    %26 = arith.mulf %5, %25 : vector<8x128xf32>
    %27 = vector.broadcast %24 : vector<1x128xf32> to vector<8x128xf32>
    %28 = arith.addf %26, %27 : vector<8x128xf32>
    %cst_13 = arith.constant 5.000000e-01 : f32
    %29 = vector.broadcast %cst_13 : f32 to vector<8x128xf32>
    %30 = arith.mulf %29, %28 : vector<8x128xf32>
    %cst_14 = arith.constant 0.707106769 : f32
    %31 = vector.broadcast %cst_14 : f32 to vector<8x128xf32>
    %32 = arith.mulf %28, %31 : vector<8x128xf32>
    %33 = math.erf %32 : vector<8x128xf32>
    %cst_15 = arith.constant 1.000000e+00 : f32
    %34 = vector.broadcast %cst_15 : f32 to vector<8x128xf32>
    %35 = arith.addf %34, %33 : vector<8x128xf32>
    %36 = arith.mulf %30, %35 : vector<8x128xf32>
    %c0_16 = arith.constant 0 : index
    %c0_17 = arith.constant 0 : index
    %37 = vector.load %arg8[%c0_16, %c0_17] : memref<8x128xf32, #tpu.memory_space<vmem>>, vector<8x128xf32>
    %38 = arith.truncf %36 : vector<8x128xf32> to vector<8x128xbf16>
    %c0_18 = arith.constant 0 : index
    %c0_19 = arith.constant 0 : index
    %39 = vector.load %arg6[%c0_18, %c0_19] : memref<128x128xbf16, #tpu.memory_space<vmem>>, vector<128x128xbf16>
    %cst_20 = arith.constant dense<0.000000e+00> : vector<8x128xf32>
    %40 = tpu.matmul %38, %39, %cst_20 {dimension_numbers = #tpu.dot_dimension_numbers<[1], [0], [0], [1], [0, 0, 1, 1], [], []>} : vector<8x128xbf16>, vector<128x128xbf16>, vector<8x128xf32> -> vector<8x128xf32>
    %41 = arith.addf %37, %40 : vector<8x128xf32>
    %c0_21 = arith.constant 0 : index
    %c0_22 = arith.constant 0 : index
    %42 = vector.load %arg8[%c0_21, %c0_22] : memref<8x128xf32, #tpu.memory_space<vmem>>, vector<8x128xf32>
    tpu.vector_store %arg8[%c0_21, %c0_22], %41 {strides = array<i32>} : memref<8x128xf32, #tpu.memory_space<vmem>>, vector<8x128xf32>,
    %c1_i32 = arith.constant 1 : i32
    %43 = arith.cmpi eq, %arg1, %c1_i32 : i32
    %44 = arith.extui %43 : i1 to i32
    %c0_i32_23 = arith.constant 0 : i32
    %45 = arith.cmpi ne, %44, %c0_i32_23 : i32
    scf.if %45 {
      %c0_24 = arith.constant 0 : index
      %c0_25 = arith.constant 0 : index
      %46 = vector.load %arg8[%c0_24, %c0_25] : memref<8x128xf32, #tpu.memory_space<vmem>>, vector<8x128xf32>
      %c0_26 = arith.constant 0 : index
      %c0_27 = arith.constant 0 : index
      %c0_28 = arith.constant 0 : index
      %47 = vector.load %arg7[%c0_26, %c0_27, %c0_28] : memref<1x8x128xf32, #tpu.memory_space<vmem>>, vector<1x8x128xf32>
      %48 = vector.shape_cast %47 : vector<1x8x128xf32> to vector<8x128xf32>
      %49 = vector.shape_cast %46 : vector<8x128xf32> to vector<1x8x128xf32>
      tpu.vector_store %arg7[%c0_26, %c0_27, %c0_28], %49 {strides = array<i32>} : memref<1x8x128xf32, #tpu.memory_space<vmem>>, vector<1x8x128xf32>,
    } else {
    }
    return
  }
  func.func @transform_0(%arg0: i32, %arg1: i32) -> (i32, i32) {
    %c0_i32 = arith.constant 0 : i32
    %c0_i32_0 = arith.constant 0 : i32
    %c0_i32_1 = arith.constant 0 : i32
    return %c0_i32, %c0_i32_0 : i32, i32
  }
  func.func @transform_1(%arg0: i32, %arg1: i32) -> (i32, i32) {
    %c2_i32 = arith.constant 2 : i32
    %0 = arith.muli %arg0, %c2_i32 : i32
    %1 = arith.addi %0, %arg1 : i32
    %c0_i32 = arith.constant 0 : i32
    %c0_i32_0 = arith.constant 0 : i32
    return %c0_i32, %1 : i32, i32
  }
  func.func @transform_2(%arg0: i32, %arg1: i32) -> (i32, i32) {
    %c2_i32 = arith.constant 2 : i32
    %0 = arith.muli %arg0, %c2_i32 : i32
    %1 = arith.addi %0, %arg1 : i32
    %c0_i32 = arith.constant 0 : i32
    %c0_i32_0 = arith.constant 0 : i32
    return %c0_i32, %1 : i32, i32
  }
  func.func @transform_3(%arg0: i32, %arg1: i32) -> (i32, i32) {
    %c2_i32 = arith.constant 2 : i32
    %0 = arith.muli %arg0, %c2_i32 : i32
    %1 = arith.addi %0, %arg1 : i32
    %c0_i32 = arith.constant 0 : i32
    %c0_i32_0 = arith.constant 0 : i32
    return %c0_i32, %1 : i32, i32
  }
  func.func @transform_4(%arg0: i32, %arg1: i32) -> (i32, i32) {
    %c2_i32 = arith.constant 2 : i32
    %0 = arith.muli %arg0, %c2_i32 : i32
    %1 = arith.addi %0, %arg1 : i32
    %c0_i32 = arith.constant 0 : i32
    %c0_i32_0 = arith.constant 0 : i32
    return %1, %c0_i32 : i32, i32
  }
  func.func @transform_5(%arg0: i32, %arg1: i32) -> (i32, i32, i32) {
    %c0_i32 = arith.constant 0 : i32
    %c0_i32_0 = arith.constant 0 : i32
    %c0_i32_1 = arith.constant 0 : i32
    return %arg0, %c0_i32, %c0_i32_0 : i32, i32, i32
  }
}

</mosaic_0001>

<bundles_post_ra>
// kernel: tpu_custom_call.1
= control target key start
LH: loop header
LB: loop body
LE: loop exit
PB: predicated region body
PF: predicated region fallthrough
CT: control target
= control target key end

     0   :  { %s1681_s0 = inlined_call_operand.hbm [shape: bf16[8,128], index: 0, kind: input, shape index: {}]   ;;  %s1682_s1 = inlined_call_operand.hbm [shape: bf16[128,512], index: 1, kind: input, shape index: {}]   ;;  %s1683_s2 = inlined_call_operand.hbm [shape: f32[1,512], index: 2, kind: input, shape index: {}]   ;;  %s1684_s3 = inlined_call_operand.vmem [shape: f32[1,512], index: 3, kind: input, shape index: {}]   ;;  %s1685_s4 = inlined_call_operand.hbm [shape: bf16[512,128], index: 4, kind: input, shape index: {}]   ;;  %s1686_s5 = inlined_call_operand.hbm [shape: f32[2,8,128], index: 5, kind: output, shape index: {}]  }
   0x1   :  { %1700 = sst [smem:[#allocation23_spill]] %s1682_s1 }
   0x2   :  { %1701 = sst [smem:[#allocation24_spill]] %s1684_s3 }
   0x3   :  { %1702 = sst [smem:[#allocation25_spill]] %s1686_s5 }
   0x4   :  { %10 = vsyncpa [#allocation4], 0 }
   0x5   :  { %11 = vsyncpa [#allocation7], 0 }
   0x6   :  { %13 = vsyncpa [#allocation7 + $0x1], 0 }
   0x7   :  { %14 = vsyncpa [#allocation10], 0 }
   0x8   :  { %16 = vsyncpa [#allocation10 + $0x1], 0 }
   0x9   :  { %17 = vsyncpa [#allocation5], 0 }
   0xa   :  { %19 = vsyncpa [#allocation5 + $0x1], 0  ;;  %s1360_s18 = smov 0   ;;  %s1362_s19 = smov 0  }
   0xb   :  { %s1364_s20 = smov 0   ;;  %s1366_s21 = smov 0  }
   0xc   :  { %s1368_s22 = smov 0   ;;  %s1370_s23 = smov 0  }
   0xd   :  { %s1372_s24 = smov 0   ;;  %s1374_s25 = smov 0  }
   0xe   :  { %s1376_s26 = smov 0   ;;  %s1378_s27 = smov 0  }
   0xf   :  { %s1380_s28 = smov 0  }
  0x10 LB: > { %1703 = sst [smem:[#allocation16_spill]] %s1301_s24  ;;  %s34_s29 = sadd.s32 1, %s1309_s26  ;;  %s1317_s28 = sphi %s1380_s28, %s25_s28   ;;  %s1313_s27 = sphi %s1378_s27, %s1738_s27   ;;  %s1309_s26 = sphi %s1376_s26, %s1745_s26   ;;  %s1305_s25 = sphi %s1374_s25, %s1736_s25   ;;  %s1301_s24 = sphi %s1372_s24, %s1735_s24   ;;  %s1297_s23 = sphi %s1370_s23, %s1744_s23   ;;  %s1293_s22 = sphi %s1368_s22, %s1743_s22   ;;  %s1289_s21 = sphi %s1366_s21, %s1742_s21   ;;  %s1285_s20 = sphi %s1364_s20, %s1741_s20   ;;  %s1281_s19 = sphi %s1362_s19, %s1740_s19   ;;  %s1277_s18 = sphi %s1360_s18, %s1739_s18  }
  0x11   : > { %1704 = sst [smem:[#allocation17_spill]] %s1305_s25  ;;  %s37_s30 = sadd.s32 1, %s1313_s27 }
  0x12   : > { %1705 = sst [smem:[#allocation18_spill]] %s1309_s26  ;;  %p35_p0 = scmp.ge.s32.totalorder %s34_s29, 2 }
  0x13   : > { %1706 = sst [smem:[#allocation19_spill]] %s1313_s27  ;;  %s823_s6 = sshll.u32 %s1313_s27, 1 }
  0x14   : > { %s1419_s7 = sadd.s32 %s1309_s26, %s823_s6  ;;  %s69_s8 = sadd.s32 1, %s1297_s23 }
  0x15   : > { %s1747_s29 = smov (%p35_p0, %s34_s29), 0  ;;  %s1749_s30 = smov (!%p35_p0, %s37_s30), %s1313_s27 }
  0x16   : > { %1707 = sst [smem:[#allocation20_spill]] %s1747_s29  ;;  %p76_p1 = scmp.ne.s32.totalorder %s1297_s23, %s1293_s22 }
  0x17   : > { %p77_p2 = scmp.eq.s32.totalorder %s1317_s28, 0  ;;  %p39_p3 = scmp.ge.s32.totalorder %s1749_s30, 2 }
  0x18   : > { %p961_p5 = scmp.lt.s32.totalorder %s1317_s28, 4  ;;  %s233_s10 = sand.u32 1, %s1317_s28  }
  0x19   : > { %p1428_p4 = por %p77_p2, %p76_p1  ;;  %s1751_s30 = smov (%p39_p3, %s1749_s30), 0 }
  0x1a   : > { %1709 = sst [smem:[#allocation21_spill]] %s1751_s30  ;;  %s1437_s11 = sand.u32 1, %s1297_s23  }
  0x1b   : > { %s824_s12 = sshll.u32 %s1751_s30, 1  ;;  %s1692_s14 = sshll.u32 %s1437_s11, 6 }
  0x1c   : > { %s65_s13 = sadd.s32 %s824_s12, %s1747_s29  ;;  %s836_s16 = sshll.u32 %s1419_s7, 6 }
  0x1d   : > { %s66_s15 = ssub.s32 %s1419_s7, %s65_s13  ;;  %s1710_s1 = sld [smem:[#allocation23_spill]] }
  0x1e   : > { %p67_p6 = scmp.eq.s32.totalorder %s66_s15, 0  ;;  %s237_s5 = scalar_lea.vmem [#allocation6], %s1692_s14 }
  0x1f   : > { %s245_s3 = sshll.u32 %s237_s5, 4  ;;  %p1456_p7 = pnand %p961_p5, %p1428_p4  ;;  %s246_s3 = int_to_ptr.vmem [resolvable:$true] %s245_s3 }
  0x20   : > { %s1450_s24 = scalar_select %p67_p6, %s1297_s23, %s69_s8  }
  0x21   : > { %s1460_s12 = scalar_lea.sflag [#allocation7], %s233_s10  ;;  %p1698_p8 = pneg %p1456_p7 }
  0x22   : > { %1711 = sst [smem:[#allocation22_spill]] %s1450_s24  ;;  %s1092_s13 = scalar_lea.vmem %s246_s3, 1024 }
  0x23   : > { %s244_s26 = scalar_lea.hbm %s1710_s1, %s836_s16  ;;  %p1093_p9 = scmp.ne.s32.totalorder %s246_s3, %s1092_s13 }
  0x24   : > { %s1319_s5 = smov [#allocation6]  }
  0x25   : > { %p1095_p10 = pnand %p1093_p9, %p1698_p8  ;;  %s1097_s8 = sshll.u32 %s1319_s5, 4  ;;  %s1098_s8 = int_to_ptr.vmem [resolvable:$false] %s1097_s8 }
  0x26   : > { %s1099_s9 = scalar_lea.vmem %s1098_s8, 2048  ;;  %p1100_p12 = scmp.lt.s32.totalorder %s246_s3, %s1098_s8 }
  0x27   : > { %p1096_p11 = pneg %p1095_p10  ;;  %p1101_p13 = scmp.lt.s32.totalorder %s1099_s9, %s1092_s13 }
  0x29   : > { %p1102_p0 = por %p1101_p13, %p1100_p12 }
  0x2b   : > { %p1103_p1 = pnand %p1102_p0, %p1096_p11 }
  0x2d   : > { %1106 = shalt.err (!%p1103_p1)
}
  0x2e   : > { %s1320_s15 = smov 256   ;;  %s1690_s10 = smov 64  }
  0x2f   : > { %s1691_s16 = smov 4   ;;  %s1473_s17 = sadd.s32 4294967295, %s1317_s28  }
  0x30   : > { %949 = dma.hbm_to_vmem [thread:$0]  (!%p1456_p7), %s244_s26, 1024, %s246_s3, %s1460_s12, %s1320_s15, %s1690_s10, %s1691_s16  }
  0x31   : > { %s822_s6 = sadd.s32 4294967294, %s1317_s28   ;;  %p82_p2 = scmp.ne.s32.totalorder %s1293_s22, %s1289_s21 }
  0x32   : > { %p1697_p3 = scmp.eq.s32.totalorder %s1473_s17, 0  ;;  %s182_s13 = ssub.s32 %s1313_s27, %s1751_s30 }
  0x33   : > { %s185_s5 = sadd.s32 1, %s1285_s20  ;;  %p183_p5 = scmp.eq.s32.totalorder %s182_s13, 0 }
  0x34   : > { %p1484_p4 = por %p1697_p3, %p82_p2  ;;  %p195_p6 = scmp.ne.s32.totalorder %s1285_s20, %s1281_s19 }
  0x35   : > { %p196_p9 = scmp.eq.s32.totalorder %s1473_s17, 3  ;;  %p201_p11 = scmp.ne.s32.totalorder %s1281_s19, %s1277_s18 }
  0x36   : > { %s1713_s8 = scalar_select %p1484_p4, 1, 0 }
  0x37   : > { %s1492_s3 = scalar_select %p183_p5, %s1285_s20, %s185_s5  }
  0x38   : > { %p1494_p10 = por %p196_p9, %p195_p6  ;;  %p202_p12 = scmp.eq.s32.totalorder %s822_s6, 3 }
  0x39   : > { %p831_p13 = scmp.ge.s32.totalorder %s1317_s28, 1  ;;  %p209_p0 = scmp.lt.s32.totalorder %s1317_s28, 5 }
  0x3a   : > { %s1714_s26 = scalar_select %p1494_p10, 1, 0 }
  0x3b   : > { %p1502_p1 = por %p202_p12, %p201_p11  ;;  %p1506_p2 = pnand %p831_p13, %p209_p0 }
  0x3c   : > { %s1323_s15 = smov [#allocation3]   ;;  %s838_s5 = sshll.u32 %s1419_s7, 4 }
  0x3d   : > { %s1715_s21 = scalar_select %p1502_p1, 1, 0 }
  0x3e   : > { %s222_s13 = sshll.u32 %s1323_s15, 4  ;;  %p942_p5 = pneg %p1506_p2  ;;  %s1510_s13 = int_to_ptr.vmem [resolvable:$true] %s222_s13 }
  0x3f   : > { %s265_s16 = scalar_lea.hbm %s1683_s2, %s838_s5  ;;  %s258_s14 = scalar_lea.vmem [#allocation8], %s1437_s11 }
  0x40   : > { %s267_s1 = sshll.u32 %s258_s14, 4  ;;  %p1521_p6 = pnand %p942_p5, %p1697_p3  ;;  %s268_s1 = int_to_ptr.vmem [resolvable:$true] %s267_s1 }
  0x41   : > { %s1120_s29 = scalar_lea.vmem %s268_s1, 16  ;;  %s1324_s15 = smov [#allocation8]  }
  0x42   : > { %p1121_p9 = scmp.ne.s32.totalorder %s268_s1, %s1120_s29  ;;  %s1125_s27 = sshll.u32 %s1324_s15, 4  ;;  %s1126_s27 = int_to_ptr.vmem [resolvable:$false] %s1125_s27 }
  0x43   : > { %s1127_s24 = scalar_lea.vmem %s1126_s27, 32  ;;  %p1128_p13 = scmp.lt.s32.totalorder %s268_s1, %s1126_s27 }
  0x44   : > { %p1123_p11 = pnand %p1121_p9, %p1698_p8  ;;  %p1129_p0 = scmp.lt.s32.totalorder %s1127_s24, %s1120_s29 }
  0x46   : > { %p1124_p12 = pneg %p1123_p11  ;;  %p1130_p1 = por %p1129_p0, %p1128_p13 }
  0x48   : > { %p1131_p10 = pnand %p1130_p1, %p1124_p12 }
  0x4a   : > { %1134 = shalt.err (!%p1131_p10)
}
  0x4b   : > { %952 = dma.hbm_to_vmem [thread:$0]  (!%p1456_p7), %s265_s16, 16, %s268_s1, %s1460_s12  }
  0x4c   : > { %p1137_p5 = pneg %p1521_p6  ;;  %s1146_s14 = scalar_lea.vmem %s1510_s13, 64 }
  0x4d   : > { %p1147_p9 = scmp.ne.s32.totalorder %s1510_s13, %s1146_s14  ;;  %p1154_p8 = scmp.lt.s32.totalorder %s1510_s13, %s1510_s13 }
  0x4e   : > { %p1155_p4 = scmp.lt.s32.totalorder %s1146_s14, %s1146_s14 }
  0x4f   : > { %p1149_p11 = pnand %p1147_p9, %p1137_p5 }
  0x50   : > { %p1156_p13 = por %p1155_p4, %p1154_p8 }
  0x51   : > { %p1150_p3 = pneg %p1149_p11 }
  0x53   : > { %p1157_p1 = pnand %p1156_p13, %p1150_p3 }
  0x55   : > { %1160 = shalt.err (!%p1157_p1)
}
  0x56   : > { %945 = dma.hbm_to_vmem [thread:$0]  (!%p1521_p6), %s1681_s0, 64, %s1510_s13, [#allocation4]  }
  0x57   : > { %s871_s1 = sshll.u32 %s1419_s7, 10  ;;  %s1718_s16 = sshll.u32 %s1437_s11, 6 }
  0x58   : > { %s296_s10 = scalar_lea.hbm %s1685_s4, %s871_s1  ;;  %s288_s5 = scalar_lea.vmem [#allocation9], %s1718_s16 }
  0x59   : > { %s297_s6 = sshll.u32 %s288_s5, 4  ;;  %s285_s15 = scalar_lea.sflag [#allocation10], %s1437_s11  ;;  %s298_s6 = int_to_ptr.vmem [resolvable:$true] %s297_s6 }
  0x5a   : > { %s1174_s30 = scalar_lea.vmem %s298_s6, 1024  ;;  %p1719_p3 = pneg %p1456_p7 }
  0x5b   : > { %p1175_p8 = scmp.ne.s32.totalorder %s298_s6, %s1174_s30  ;;  %s1325_s14 = smov [#allocation9]  }
  0x5c   : > { %s1179_s24 = sshll.u32 %s1325_s14, 4  ;;  %s1180_s24 = int_to_ptr.vmem [resolvable:$false] %s1179_s24 }
  0x5d   : > { %p1177_p4 = pnand %p1175_p8, %p1719_p3  ;;  %s1181_s13 = scalar_lea.vmem %s1180_s24, 2048 }
  0x5e   : > { %p1182_p6 = scmp.lt.s32.totalorder %s298_s6, %s1180_s24  ;;  %p1183_p12 = scmp.lt.s32.totalorder %s1181_s13, %s1174_s30 }
  0x5f   : > { %p1178_p10 = pneg %p1177_p4 }
  0x60   : > { %p1184_p0 = por %p1183_p12, %p1182_p6 }
  0x62   : > { %p1185_p5 = pnand %p1184_p0, %p1178_p10 }
  0x64   : > { %1188 = shalt.err (!%p1185_p5)
}
  0x65   : > { %s1720_s7 = smov 4   ;;  %s1721_s27 = smov 64  }
  0x66   : > { %955 = dma.hbm_to_vmem [thread:$0]  (!%p1456_p7), %s296_s10, 1024, %s298_s6, %s285_s15, %s1721_s27, %s1721_s27, %s1720_s7  }
  0x67   : > { %309 = sbr.rel (%p1506_p2) target bundleno = 669 (0x29d), region = 40  ;;  %p1722_p9 = scmp.eq.s32.totalorder (!%p1506_p2), %s1473_s17, 0 }
  0x6c   : > { %1260 = dma.done.wait (%p1722_p9), [#allocation4], 64   ;;  %p1723_p11 = pmov %p1722_p9 }
  0x6d   : > { %s315_s11 = sand.u32 1, %s1473_s17   ;;  %s1566_s1 = sand.u32 1, %s1293_s22  }
  0x6e   : > { %1262 = vsyncadd (%p1723_p11), [#allocation4], 4294967232  ;;  %s845_s25 = sshll.u32 %s1566_s1, 6  ;;  %s316_s29 = scalar_lea.sflag [#allocation7], %s315_s11 }
  0x6f   : > { %s1569_s12 = scalar_lea.vmem [#allocation6], %s845_s25  ;;  %p1724_p7 = scmp.ne.s32.totalorder %s1713_s8, 0 }
  0x71   : > { %1264 = dma.done.wait (%p1724_p7), %s316_s29, 1040  }
  0x72   : > { %1266 = vsyncadd (%p1724_p7), %s316_s29, 4294966256  ;;  %s327_s9 = scalar_lea.vmem [#allocation8], %s1566_s1  ;;  %s333_s10 = scalar_lea.sflag [#allocation10], %s1566_s1 }
  0x73   : > { %s1577_s16 = scalar_lea.vmem [#allocation9], %s845_s25 }
  0x74   : > { %1268 = dma.done.wait (%p1724_p7), %s333_s10, 1024  }
  0x75   : > { %1270 = vsyncadd (%p1724_p7), %s333_s10, 4294966272  ;;  %s1725_s17 = sld [smem:[#allocation17_spill]]  ;;  %s374_s6 = sand.u32 1, %s1281_s19  }
  0x76   : > { %s1726_s5 = sld [smem:[#allocation16_spill]]  ;;  %s1587_s30 = sshll.u32 %s374_s6, 3 }
  0x77   : > { %s1727_s7 = sld [smem:[#allocation24_spill]]  ;;  %s376_s27 = scalar_lea.vmem [#allocation11], %s1587_s30 }
  0x7b   : > { %s848_s15 = sshll.u32 %s1725_s17, 1 }
  0x7c   : > { %s382_s14 = sadd.s32 %s1726_s5, %s848_s15  ;;  %p849_p13 = scmp.ne.s32.totalorder %s1726_s5, 0 }
  0x7d   : > { %p383_p2 = scmp.lt.s32.totalorder %s382_s14, 3 }
  0x7e   : > { %395 = sbr.rel (%p849_p13) target bundleno = 133 (0x85), region = 60 }
  0x7f   : > { %s1753_s14 = smov (!%p383_p2, %s382_s14), 3 }
  0x80   : > { %s385_s8 = scalar_lea.vmem %s1727_s7, %s1753_s14 }
  0x83   : > { %v1326_v0 = vmov 0.0  }
  0x84   : > { %396 = vst [vmem:[#allocation2] sm:$0xff] %v1326_v0 }
  0x85 PF: > { %v1059_v1 = vld [vmem:[%s1569_s12 + $0x38] sm:$0xff]   ;;  %v1327_v2 = vmov 0.0   ;;  %v1060_v3 = vld [vmem:[%s1569_s12 + $0x30] sm:$0xff]   ;;  %vm1328_vm0 = vmmov 0   ;;  %v1061_v4 = vld [vmem:[%s1569_s12 + $0x28] sm:$0xff]   ;;  %v527_v40 = vlaneseq  ;;  %s1729_s1 = sld [smem:[#allocation16_spill]] }
  0x86   : > { %890 = vmatprep.subr.bf16.mxu0 %v1327_v2  ;;  %910 = vmatprep.subr.bf16.mxu1 %v1327_v2  ;;  %v1062_v5 = vld [vmem:[%s1569_s12 + $0x20] sm:$0xff]   ;;  %v1063_v6 = vld [vmem:[%s1569_s12 + $0x18] sm:$0xff]   ;;  %v1064_v7 = vld [vmem:[%s1569_s12 + $0x10] sm:$0xff]  }
  0x87   : > { %891 = vmatpush3.bf16.msra.mxu0 %v1059_v1  ;;  %906 = vmatprep.mubr.msk.bf16.mxu0 %vm1328_vm0, %v1327_v2  ;;  %v1065_v8 = vld [vmem:[%s1569_s12 + $0x8] sm:$0xff]   ;;  %v1066_v9 = vld [vmem:[%s1569_s12] sm:$0xff]   ;;  %v397_v10 = vld [vmem:[#allocation3] sm:$0xf]  ;;  %v528_v41 = vshrl.u32 %v527_v40, 7 }
  0x88   : > { %892 = vmatprep.subr.bf16.mxu0 %v1327_v2  ;;  %926 = vmatprep.mubr.msk.bf16.mxu1 %vm1328_vm0, %v1327_v2  ;;  %v1067_v11 = vld [vmem:[%s1577_s16 + $0x38] sm:$0xff]   ;;  %v1068_v12 = vld [vmem:[%s1577_s16 + $0x30] sm:$0xff]   ;;  %v1069_v13 = vld [vmem:[%s1577_s16 + $0x28] sm:$0xff]  }
  0x89   : > { %911 = vmatpush3.bf16.msra.mxu1 %v1067_v11  ;;  %v1070_v14 = vld [vmem:[%s1577_s16 + $0x20] sm:$0xff]   ;;  %v1071_v15 = vld [vmem:[%s1577_s16 + $0x18] sm:$0xff]   ;;  %v1072_v16 = vld [vmem:[%s1577_s16 + $0x10] sm:$0xff]   ;;  %v529_v43 = vsub.s32 0, %v528_v41 }
  0x8a   : > { %912 = vmatprep.subr.bf16.mxu1 %v1327_v2  ;;  %v1073_v17 = vld [vmem:[%s1577_s16 + $0x8] sm:$0xff]   ;;  %v1074_v18 = vld [vmem:[%s1577_s16] sm:$0xff]   ;;  %v519_v42 = vld [vmem:[%s327_s9] sm:$0x1] }
  0x8b   : > { %893 = vmatpush3.bf16.msra.mxu0 %v1060_v3  ;;  %v523_v46 = vld [vmem:[%s385_s8] sm:$0x1]  ;;  %p866_p1 = scmp.ne.s32.totalorder %s1729_s1, 1 }
  0x8c   : > { %894 = vmatprep.subr.bf16.mxu0 %v1327_v2  ;;  %v545_v59 = vld [vmem:[#allocation2] sm:$0xff] }
  0x8d   : > { %913 = vmatpush3.bf16.msra.mxu1 %v1068_v12 }
  0x8e   : > { %914 = vmatprep.subr.bf16.mxu1 %v1327_v2 }
  0x8f   : > { %895 = vmatpush3.bf16.msra.mxu0 %v1061_v4 }
  0x90   : > { %896 = vmatprep.subr.bf16.mxu0 %v1327_v2 }
  0x91   : > { %915 = vmatpush3.bf16.msra.mxu1 %v1069_v13 }
  0x92   : > { %916 = vmatprep.subr.bf16.mxu1 %v1327_v2 }
  0x93   : > { %897 = vmatpush3.bf16.msra.mxu0 %v1062_v5 }
  0x94   : > { %898 = vmatprep.subr.bf16.mxu0 %v1327_v2 }
  0x95   : > { %917 = vmatpush3.bf16.msra.mxu1 %v1070_v14 }
  0x96   : > { %918 = vmatprep.subr.bf16.mxu1 %v1327_v2 }
  0x97   : > { %899 = vmatpush3.bf16.msra.mxu0 %v1063_v6 }
  0x98   : > { %900 = vmatprep.subr.bf16.mxu0 %v1327_v2 }
  0x99   : > { %919 = vmatpush3.bf16.msra.mxu1 %v1071_v15 }
  0x9a   : > { %920 = vmatprep.subr.bf16.mxu1 %v1327_v2 }
  0x9b   : > { %901 = vmatpush3.bf16.msra.mxu0 %v1064_v7 }
  0x9c   : > { %902 = vmatprep.subr.bf16.mxu0 %v1327_v2 }
  0x9d   : > { %921 = vmatpush3.bf16.msra.mxu1 %v1072_v16 }
  0x9e   : > { %922 = vmatprep.subr.bf16.mxu1 %v1327_v2 }
  0x9f   : > { %903 = vmatpush3.bf16.msra.mxu0 %v1065_v8 }
  0xa0   : > { %904 = vmatprep.subr.bf16.mxu0 %v1327_v2 }
  0xa1   : > { %923 = vmatpush3.bf16.msra.mxu1 %v1073_v17 }
  0xa2   : > { %924 = vmatprep.subr.bf16.mxu1 %v1327_v2 }
  0xa3   : > { %905 = vmatpush3.bf16.msra.mxu0 %v1066_v9 }
  0xa5   : > { %925 = vmatpush3.bf16.msra.mxu1 %v1074_v18 }
  0xa6   : > { %907 = vmatmul.mubr.bf16.vlgmr.msra.gmra.mxu0 %v397_v10 }
 0x166   : > { %v496_v19 = vpop.f32.mrf.mxu0 }
 0x167   : > { %v502_v20 = vrot.slane %v496_v19, 4 }
 0x168   : > { %v908_v21 = vpop.f32.mrf.mxu0 }
 0x169   : > { %v503_v22 = vadd.f32 %v502_v20, %v496_v19 }
 0x16a   : > { %v499_v23 = vpop.f32.mrf.mxu0 }
 0x16b   : > { %v504_v24 = vrot.slane %v503_v22, 2 }
 0x16c   : > { %v909_v25 = vpop.f32.mrf.mxu0 }
 0x16d   : > { %v505_v26 = vadd.f32 %v504_v24, %v503_v22 }
 0x16f   : > { %v506_v27 = vrot.slane %v505_v26, 1 }
 0x171   : > { %v507_v28 = vadd.f32 %v506_v27, %v505_v26 }
 0x173   : > { %v509_v29 = vmul.f32 0.125, %v507_v28 }
 0x175   : > { %v510_v30 = vsub.f32 %v496_v19, %v509_v29 }
 0x177   : > { %v511_v31 = vmul.f32 %v510_v30, %v510_v30 }
 0x179   : > { %v512_v32 = vrot.slane %v511_v31, 4 }
 0x17b   : > { %v513_v33 = vadd.f32 %v512_v32, %v511_v31 }
 0x17d   : > { %v514_v34 = vrot.slane %v513_v33, 2 }
 0x17f   : > { %v515_v35 = vadd.f32 %v514_v34, %v513_v33 }
 0x181   : > { %v516_v36 = vrot.slane %v515_v35, 1 }
 0x183   : > { %v517_v37 = vadd.f32 %v516_v36, %v515_v35 }
 0x185   : > { %v518_v38 = vmul.f32 0.125, %v517_v37 }
 0x187   : > { %v520_v39 = vadd.f32 1e-05, %v518_v38 }
 0x189   : > { %1075 = vrsqrt.f32 %v520_v39 }
 0x196   : > { %v1076_v44 = vpop.eup %1075 }
 0x197   : > { %v522_v45 = vmul.f32 %v1076_v44, %v519_v42 }
 0x199   : > { %v524_v47 = vmul.f32 %v522_v45, %v509_v29  ;;  %v530_v48 = vrot.slane %v522_v45, %v529_v43 }
 0x19b   : > { %v525_v49 = vsub.f32 %v523_v46, %v524_v47  ;;  %v532_v50 = vmul.f32 %v530_v48, %v496_v19 }
 0x19d   : > { %v537_v51 = vrot.slane %v525_v49, %v529_v43 }
 0x19f   : > { %v539_v52 = vadd.f32 %v537_v51, %v532_v50 }
 0x1a1   : > { %v541_v53 = vmul.f32 0.70710677, %v539_v52  ;;  %v540_v55 = vmul.f32 0.5, %v539_v52 }
 0x1a3   : > { %1077 = verf.f32 %v541_v53 }
 0x1b0   : > { %v1078_v54 = vpop.eup %1077 }
 0x1b1   : > { %v543_v56 = vadd.f32 1.0, %v1078_v54 }
 0x1b3   : > { %v544_v57 = vmul.f32 %v543_v56, %v540_v55 }
 0x1b5   : > { %v546_v58 = vpack.c.bf16 %v544_v57, %v544_v57 }
 0x1b7   : > { %927 = vmatmul.mubr.bf16.vlgmr.msra.gmra.mxu1 %v546_v58 }
 0x277   : > { %v645_v60 = vpop.f32.mrf.mxu1 }
 0x278   : > { %v651_v61 = vadd.f32 %v645_v60, %v545_v59 }
 0x279   : > { %v928_v62 = vpop.f32.mrf.mxu1  ;;  %656 = sbr.rel (%p866_p1) target bundleno = 643 (0x283), region = 64 }
 0x27a   : > { %652 = vst [vmem:[#allocation2] sm:$0xff] %v651_v61 }
 0x27b   : > { %v648_v63 = vpop.f32.mrf.mxu1 }
 0x27d   : > { %v929_v0 = vpop.f32.mrf.mxu1 }
 0x281   : > { %v657_v1 = vld [vmem:[#allocation2] sm:$0xff] }
 0x282   : > { %658 = vst [vmem:[%s376_s27] sm:$0xff] %v657_v1 }
 0x283 PF: > { %s1730_s12 = sld [smem:[#allocation17_spill]]  ;;  %s673_s15 = sshll.u32 %s376_s27, 4  ;;  %s674_s15 = int_to_ptr.vmem [resolvable:$true] %s673_s15 }
 0x284   : > { %s1731_s17 = sld [smem:[#allocation25_spill]]  ;;  %s660_s14 = scalar_lea.sflag [#allocation5], %s374_s6 }
 0x285   : > { %s1189_s24 = scalar_lea.vmem %s674_s15, 128  ;;  %p1732_p3 = scmp.ne.s32.totalorder %s1714_s26, 0 }
 0x286   : > { %p1190_p8 = scmp.ne.s32.totalorder %s674_s15, %s1189_s24  ;;  %s1329_s13 = smov [#allocation11]  }
 0x287   : > { %s1193_s7 = sshll.u32 %s1329_s13, 4  ;;  %s1194_s7 = int_to_ptr.vmem [resolvable:$false] %s1193_s7 }
 0x288   : > { %p1191_p4 = pnand %p1190_p8, %p1732_p3  ;;  %s1195_s8 = scalar_lea.vmem %s1194_s7, 256 }
 0x289   : > { %s868_s9 = sshll.u32 %s1730_s12, 7  ;;  %p1196_p6 = scmp.lt.s32.totalorder %s674_s15, %s1194_s7 }
 0x28a   : > { %s671_s5 = scalar_lea.hbm %s1731_s17, %s868_s9  ;;  %p1192_p10 = pneg %p1191_p4 }
 0x28b   : > { %p1197_p12 = scmp.lt.s32.totalorder %s1195_s8, %s1189_s24 }
 0x28d   : > { %p1198_p0 = por %p1197_p12, %p1196_p6 }
 0x28f   : > { %p1199_p5 = pnand %p1198_p0, %p1192_p10 }
 0x291   : > { %1202 = shalt.err (!%p1199_p5)
}
 0x292   : > { %s1203_s11 = scalar_lea.hbm %s671_s5, 128  ;;  %s1207_s27 = scalar_lea.hbm %s1731_s17, 256 }
 0x293   : > { %p1204_p9 = scmp.ne.s32.totalorder %s671_s5, %s1203_s11  ;;  %p1208_p2 = scmp.lt.s32.totalorder %s671_s5, %s1731_s17 }
 0x294   : > { %p1209_p13 = scmp.lt.s32.totalorder %s1207_s27, %s1203_s11 }
 0x295   : > { %p1205_p11 = pnand %p1204_p9, %p1732_p3 }
 0x296   : > { %p1210_p1 = por %p1209_p13, %p1208_p2 }
 0x297   : > { %p1206_p7 = pneg %p1205_p11 }
 0x299   : > { %p1211_p8 = pnand %p1210_p1, %p1206_p7 }
 0x29b   : > { %1214 = shalt.err (!%p1211_p8)
}
 0x29c   : > { %940 = dma.vmem_to_hbm [thread:$0]  (%p1732_p3), %s674_s15, 128, %s671_s5, %s660_s14  }
 0x29d PF: > { %p963_p4 = scmp.ge.s32.totalorder %s1317_s28, 2  ;;  %s685_s1 = sand.u32 1, %s1277_s18  }
 0x29e   : > { %p1733_p10 = scmp.ne.s32.totalorder %s1715_s21, 0  ;;  %s686_s12 = scalar_lea.sflag [#allocation5], %s685_s1 }
 0x2a0   : > { %p957_p6 = pnand %p963_p4, %p1733_p10 }
 0x2a2   : > { %p958_p12 = pneg %p957_p6 }
 0x2a4   : > { %1272 = dma.done.wait (%p958_p12), %s686_s12, 128  }
 0x2a5   : > { %1274 = vsyncadd (%p958_p12), %s686_s12, 4294967168  ;;  %s25_s28 = sadd.s32 1, %s1317_s28   ;;  %s1734_s26 = sld [smem:[#allocation22_spill]] }
 0x2a6   : > { %p22_p0 = scmp.ge.s32.totalorder %s25_s28, 6   ;;  %s1735_s24 = sld [smem:[#allocation18_spill]] }
 0x2a7   : > { %s1736_s25 = sld [smem:[#allocation19_spill]]  ;;  %s1739_s18 = smov %s1281_s19 }
 0x2a8   : > { %s1737_s9 = sld [smem:[#allocation20_spill]]  ;;  %s1740_s19 = smov %s1285_s20 }
 0x2a9   : > { %s1738_s27 = sld [smem:[#allocation21_spill]]  ;;  %s1741_s20 = smov %s1492_s3 }
 0x2aa   : > { %s1742_s21 = smov %s1293_s22  ;;  %s1743_s22 = smov %s1297_s23 }
 0x2ab   : > { %s1744_s23 = smov %s1734_s26  ;;  %24 = sbr.rel (!%p22_p0) target bundleno = 16 (0x10), region = 125 }
 0x2ae   : > { %s1745_s26 = smov %s1737_s9 }
 0x2b0   :  { %691 = vsyncpa [#allocation4], 1 }
 0x2b1   :  { %693 = vsyncpa [#allocation4 + $0x1], 1 }
 0x2b2   :  { %694 = vsyncpa [#allocation7], 1 }
 0x2b3   :  { %696 = vsyncpa [#allocation7 + $0x1], 1 }
 0x2b4   :  { %697 = vsyncpa [#allocation10], 1 }
 0x2b5   :  { %699 = vsyncpa [#allocation10 + $0x1], 1 }
 0x2b6   :  { %700 = vsyncpa [#allocation5], 1 }
 0x2b7   :  { %702 = vsyncpa [#allocation5 + $0x1], 1 }

</bundles_post_ra>
